<compile_context>
chip_gen: v5e
topology: v5e:2x2
jax: 0.10.0
libtpu: 0.0.40
codegen_flags: <defaults>
</compile_context>

<pallas_src>
import functools

import jax
import jax.numpy as jnp
import numpy as np
from jax.experimental import pallas as pl
from jax.experimental.pallas import tpu as pltpu


def _round_up(x, m):
    return (x + m - 1) // m * m


def _distill_kl_kernel(ys_ref, yt_ref, out_ref, acc_ref, *,
                       inv_temp, mode, batch, block_rows, num_cls):
    i = pl.program_id(0)
    n = pl.num_programs(0)

    @pl.when(i == 0)
    def _():
        acc_ref[...] = jnp.zeros_like(acc_ref)

    # Cast once per tile; all math in f32 (native VPU path on v5e/v6e/v7x).
    ys = ys_ref[...].astype(jnp.float32) * inv_temp      # (TB, C) student / T
    yt = yt_ref[...].astype(jnp.float32) * inv_temp      # (TB, C) teacher / T

    # log_softmax(student)
    zs = ys - jnp.max(ys, axis=1, keepdims=True)
    es = jnp.exp(zs)
    ss = jnp.sum(es, axis=1, keepdims=True)
    log_ps = zs - jnp.log(ss)

    # softmax(teacher): reuse the exponentials instead of exp(log_softmax)
    zt = yt - jnp.max(yt, axis=1, keepdims=True)
    et = jnp.exp(zt)
    st = jnp.sum(et, axis=1, keepdims=True)
    pt = et * pl.reciprocal(st, approx=False)            # (TB, C)

    if mode == "kl":
        log_pt = zt - jnp.log(st)
        contrib = pt * (log_pt - log_ps)                  # (TB, C)
    elif mode == "ce":
        contrib = -pt * log_ps
    else:
        raise NotImplementedError(mode)

    # Mask rows that are only block padding (batch not multiple of block_rows).
    row = jax.lax.broadcasted_iota(jnp.int32, (block_rows, 1), 0) + i * block_rows
    valid = (row < batch).astype(jnp.float32)             # (TB, 1)

    part = jnp.sum(contrib * valid, axis=1, keepdims=True)   # (TB, 1)
    part = jnp.sum(part, axis=0, keepdims=True)              # (1, 1)
    acc_ref[...] += part

    @pl.when(i == n - 1)
    def _():
        if mode == "kl":
            scale = 1.0 / float(batch * num_cls)          # F.kl_div 'mean'
        else:
            scale = 1.0 / float(batch)                    # mean over batch
        out_ref[...] = acc_ref[...] * scale


def distill_kl(y_s, y_t, *, Temp=2.0, mode="kl", block_rows=None):
    """Pallas TPU implementation of DistillKL.forward -> scalar f32 loss."""
    assert y_s.shape == y_t.shape and y_s.ndim == 2
    B, C = y_s.shape

    # Big tiles amortize the ~0.35us per-grid-step overhead; 512 rows keeps
    # 2 inputs x 2 pipeline buffers + f32 temporaries small even for v7x VMEM.
    if block_rows is None:
        block_rows = 512
    TB = max(8, min(_round_up(block_rows, 8), _round_up(B, 8)))

    B_pad = _round_up(B, TB)
    if B_pad != B:
        pad = ((0, B_pad - B), (0, 0))
        y_s = jnp.pad(y_s, pad)
        y_t = jnp.pad(y_t, pad)

    kernel = functools.partial(
        _distill_kl_kernel, inv_temp=1.0 / float(Temp), mode=mode,
        batch=B, block_rows=TB, num_cls=C)

    out = pl.pallas_call(
        kernel,
        grid=(B_pad // TB,),
        in_specs=[pl.BlockSpec((TB, C), lambda i: (i, 0)),
                  pl.BlockSpec((TB, C), lambda i: (i, 0))],
        out_specs=pl.BlockSpec((1, 1), lambda i: (0, 0)),
        out_shape=jax.ShapeDtypeStruct((1, 1), jnp.float32),
        scratch_shapes=[pltpu.VMEM((1, 1), jnp.float32)],
        compiler_params=pltpu.CompilerParams(
            dimension_semantics=("arbitrary",)),   # reduction over batch tiles
    )(y_s, y_t)                                    # native dtype (f32 or bf16)
    # TODO(synk): on v7x a leading "parallel" core-split axis with per-core
    # partial sums would use the second TensorCore; single-core here.
    return out[0, 0]


# ------------------- pure-JAX reference (mirrors the PyTorch module) --------
def _reference(y_s, y_t, T, mode):
    log_ps = jax.nn.log_softmax(y_s / T, axis=1)
    p_t = jax.nn.softmax(y_t / T, axis=1)
    if mode == "kl":
        log_pt = jax.nn.log_softmax(y_t / T, axis=1)
        return jnp.sum(p_t * (log_pt - log_ps)) / (y_s.shape[0] * y_s.shape[1])
    return -jnp.mean(jnp.sum(log_ps * p_t, axis=1))


if __name__ == "__main__":
    B, C = 12, 10          # small shapes; block_rows=8 exercises a 2-step grid
    TEMP = 2.0
    key = jax.random.PRNGKey(0)
    k1, k2 = jax.random.split(key)
    y_s = jax.random.normal(k1, (B, C), dtype=jnp.float32)
    y_t = jax.random.normal(k2, (B, C), dtype=jnp.float32)

    for mode in ("kl", "ce"):
        got = distill_kl(y_s, y_t, Temp=TEMP, mode=mode, block_rows=8)
        jax.block_until_ready(got)
        ref = _reference(y_s, y_t, TEMP, mode)
        np.testing.assert_allclose(float(got), float(ref), rtol=1e-5, atol=1e-6)

    # native-bf16 inputs (halved HBM traffic); math still f32 inside the kernel
    got_bf16 = distill_kl(y_s.astype(jnp.bfloat16), y_t.astype(jnp.bfloat16),
                          Temp=TEMP, mode="kl")
    jax.block_until_ready(got_bf16)
    ref_bf16 = _reference(y_s.astype(jnp.bfloat16).astype(jnp.float32),
                          y_t.astype(jnp.bfloat16).astype(jnp.float32),
                          TEMP, "kl")
    np.testing.assert_allclose(float(got_bf16), float(ref_bf16),
                               rtol=5e-3, atol=5e-4)

    print("KERNEL_OK")
</pallas_src>

<mosaic_0001>
module attributes {stable_mosaic.version = 11 : i64} {
  func.func @_distill_kl_kernel(%arg0: i32, %arg1: memref<8x10xf32, #tpu.memory_space<vmem>>, %arg2: memref<8x10xf32, #tpu.memory_space<vmem>>, %arg3: memref<1x1xf32, #tpu.memory_space<vmem>>, %arg4: memref<1x1xf32, #tpu.memory_space<vmem>>) attributes {dimension_semantics = [#tpu.dimension_semantics<arbitrary>], iteration_bounds = array<i64: 2>, scalar_prefetch = 0 : i64, scratch_operands = 1 : i64, tpu.core_type = #tpu.core_type<tc>, window_params = [{transform_indices = @transform_0, window_bounds = array<i64: 8, 10>}, {transform_indices = @transform_1, window_bounds = array<i64: 8, 10>}, {pipeline_mode = #tpu.pipeline_mode<synchronous>, transform_indices = @transform_2, window_bounds = array<i64: 1, 1>}]} {
    %c0_i32 = arith.constant 0 : i32
    %0 = arith.cmpi eq, %arg0, %c0_i32 : i32
    %1 = arith.extui %0 : i1 to i32
    %c0_i32_0 = arith.constant 0 : i32
    %2 = arith.cmpi ne, %1, %c0_i32_0 : i32
    scf.if %2 {
      %cst_16 = arith.constant 0.000000e+00 : f32
      %54 = vector.broadcast %cst_16 : f32 to vector<1x1xf32>
      %c0_17 = arith.constant 0 : index
      %c0_18 = arith.constant 0 : index
      %55 = vector.load %arg4[%c0_17, %c0_18] : memref<1x1xf32, #tpu.memory_space<vmem>>, vector<1x1xf32>
      tpu.vector_store %arg4[%c0_17, %c0_18], %54 {strides = array<i32>} : memref<1x1xf32, #tpu.memory_space<vmem>>, vector<1x1xf32>,
    } else {
    }
    %c0 = arith.constant 0 : index
    %c0_1 = arith.constant 0 : index
    %3 = vector.load %arg1[%c0, %c0_1] : memref<8x10xf32, #tpu.memory_space<vmem>>, vector<8x10xf32>
    %cst = arith.constant 5.000000e-01 : f32
    %4 = vector.broadcast %cst : f32 to vector<8x10xf32>
    %5 = arith.mulf %3, %4 : vector<8x10xf32>
    %c0_2 = arith.constant 0 : index
    %c0_3 = arith.constant 0 : index
    %6 = vector.load %arg2[%c0_2, %c0_3] : memref<8x10xf32, #tpu.memory_space<vmem>>, vector<8x10xf32>
    %cst_4 = arith.constant 5.000000e-01 : f32
    %7 = vector.broadcast %cst_4 : f32 to vector<8x10xf32>
    %8 = arith.mulf %6, %7 : vector<8x10xf32>
    %cst_5 = arith.constant dense<0xFF800000> : vector<8xf32>
    %9 = vector.multi_reduction <maximumf>, %5, %cst_5 [1] : vector<8x10xf32> to vector<8xf32>
    %10 = vector.shape_cast %9 : vector<8xf32> to vector<8x1xf32>
    %11 = vector.broadcast %10 : vector<8x1xf32> to vector<8x10xf32>
    %12 = arith.subf %5, %11 : vector<8x10xf32>
    %13 = math.exp %12 : vector<8x10xf32>
    %cst_6 = arith.constant dense<0.000000e+00> : vector<8xf32>
    %14 = vector.multi_reduction <add>, %13, %cst_6 [1] : vector<8x10xf32> to vector<8xf32>
    %15 = vector.shape_cast %14 : vector<8xf32> to vector<8x1xf32>
    %16 = math.log %15 : vector<8x1xf32>
    %17 = vector.broadcast %16 : vector<8x1xf32> to vector<8x10xf32>
    %18 = arith.subf %12, %17 : vector<8x10xf32>
    %cst_7 = arith.constant dense<0xFF800000> : vector<8xf32>
    %19 = vector.multi_reduction <maximumf>, %8, %cst_7 [1] : vector<8x10xf32> to vector<8xf32>
    %20 = vector.shape_cast %19 : vector<8xf32> to vector<8x1xf32>
    %21 = vector.broadcast %20 : vector<8x1xf32> to vector<8x10xf32>
    %22 = arith.subf %8, %21 : vector<8x10xf32>
    %23 = math.exp %22 : vector<8x10xf32>
    %cst_8 = arith.constant dense<0.000000e+00> : vector<8xf32>
    %24 = vector.multi_reduction <add>, %23, %cst_8 [1] : vector<8x10xf32> to vector<8xf32>
    %25 = vector.shape_cast %24 : vector<8xf32> to vector<8x1xf32>
    %26 = tpu.reciprocal %25 : vector<8x1xf32> -> vector<8x1xf32>
    %27 = vector.broadcast %26 : vector<8x1xf32> to vector<8x10xf32>
    %28 = arith.mulf %23, %27 : vector<8x10xf32>
    %29 = math.log %25 : vector<8x1xf32>
    %30 = vector.broadcast %29 : vector<8x1xf32> to vector<8x10xf32>
    %31 = arith.subf %22, %30 : vector<8x10xf32>
    %32 = arith.subf %31, %18 : vector<8x10xf32>
    %33 = arith.mulf %28, %32 : vector<8x10xf32>
    %34 = tpu.iota {dimensions = array<i32: 0>} : vector<8x1xi32>
    %c8_i32 = arith.constant 8 : i32
    %35 = arith.muli %arg0, %c8_i32 : i32
    %36 = vector.broadcast %35 : i32 to vector<8x1xi32>
    %37 = arith.addi %34, %36 : vector<8x1xi32>
    %c12_i32 = arith.constant 12 : i32
    %38 = vector.broadcast %c12_i32 : i32 to vector<8x1xi32>
    %39 = arith.cmpi slt, %37, %38 : vector<8x1xi32>
    %40 = arith.extui %39 : vector<8x1xi1> to vector<8x1xi32>
    %41 = arith.sitofp %40 : vector<8x1xi32> to vector<8x1xf32>
    %42 = vector.broadcast %41 : vector<8x1xf32> to vector<8x10xf32>
    %43 = arith.mulf %33, %42 : vector<8x10xf32>
    %cst_9 = arith.constant dense<0.000000e+00> : vector<8xf32>
    %44 = vector.multi_reduction <add>, %43, %cst_9 [1] : vector<8x10xf32> to vector<8xf32>
    %45 = vector.shape_cast %44 : vector<8xf32> to vector<8x1xf32>
    %cst_10 = arith.constant dense<0.000000e+00> : vector<1xf32>
    %46 = vector.multi_reduction <add>, %45, %cst_10 [0] : vector<8x1xf32> to vector<1xf32>
    %47 = vector.shape_cast %46 : vector<1xf32> to vector<1x1xf32>
    %c0_11 = arith.constant 0 : index
    %c0_12 = arith.constant 0 : index
    %48 = vector.load %arg4[%c0_11, %c0_12] : memref<1x1xf32, #tpu.memory_space<vmem>>, vector<1x1xf32>
    %49 = arith.addf %48, %47 : vector<1x1xf32>
    %c0_13 = arith.constant 0 : index
    %c0_14 = arith.constant 0 : index
    %50 = vector.load %arg4[%c0_13, %c0_14] : memref<1x1xf32, #tpu.memory_space<vmem>>, vector<1x1xf32>
    tpu.vector_store %arg4[%c0_13, %c0_14], %49 {strides = array<i32>} : memref<1x1xf32, #tpu.memory_space<vmem>>, vector<1x1xf32>,
    %c1_i32 = arith.constant 1 : i32
    %51 = arith.cmpi eq, %arg0, %c1_i32 : i32
    %52 = arith.extui %51 : i1 to i32
    %c0_i32_15 = arith.constant 0 : i32
    %53 = arith.cmpi ne, %52, %c0_i32_15 : i32
    scf.if %53 {
      %c0_16 = arith.constant 0 : index
      %c0_17 = arith.constant 0 : index
      %54 = vector.load %arg4[%c0_16, %c0_17] : memref<1x1xf32, #tpu.memory_space<vmem>>, vector<1x1xf32>
      %cst_18 = arith.constant 0.00833333377 : f32
      %55 = vector.broadcast %cst_18 : f32 to vector<1x1xf32>
      %56 = arith.mulf %54, %55 : vector<1x1xf32>
      %c0_19 = arith.constant 0 : index
      %c0_20 = arith.constant 0 : index
      %57 = vector.load %arg3[%c0_19, %c0_20] : memref<1x1xf32, #tpu.memory_space<vmem>>, vector<1x1xf32>
      tpu.vector_store %arg3[%c0_19, %c0_20], %56 {strides = array<i32>} : memref<1x1xf32, #tpu.memory_space<vmem>>, vector<1x1xf32>,
    } else {
    }
    return
  }
  func.func @transform_0(%arg0: i32) -> (i32, i32) {
    %c0_i32 = arith.constant 0 : i32
    %c0_i32_0 = arith.constant 0 : i32
    return %arg0, %c0_i32 : i32, i32
  }
  func.func @transform_1(%arg0: i32) -> (i32, i32) {
    %c0_i32 = arith.constant 0 : i32
    %c0_i32_0 = arith.constant 0 : i32
    return %arg0, %c0_i32 : i32, i32
  }
  func.func @transform_2(%arg0: i32) -> (i32, i32) {
    %c0_i32 = arith.constant 0 : i32
    %c0_i32_0 = arith.constant 0 : i32
    %c0_i32_1 = arith.constant 0 : i32
    return %c0_i32, %c0_i32_0 : i32, i32
  }
}

</mosaic_0001>

<bundles_post_ra>
// kernel: tpu_custom_call.1
= control target key start
LH: loop header
LB: loop body
LE: loop exit
PB: predicated region body
PF: predicated region fallthrough
CT: control target
= control target key end

     0   :  { %7 = vsyncpa [#allocation4], 0  ;;  %s715_s0 = inlined_call_operand.hbm [shape: f32[16,10], index: 0, kind: input, shape index: {}]   ;;  %s716_s1 = inlined_call_operand.hbm [shape: f32[16,10], index: 1, kind: input, shape index: {}]   ;;  %s717_s2 = inlined_call_operand.hbm [shape: f32[1,1], index: 2, kind: output, shape index: {}]  }
   0x1   :  { %9 = vsyncpa [#allocation4 + $0x1], 0 }
   0x2   :  { %10 = vsyncpa [#allocation7], 0 }
   0x3   :  { %12 = vsyncpa [#allocation7 + $0x1], 0 }
   0x4   :  { %13 = vsyncpa [#allocation5], 0  ;;  %s582_s9 = smov 0   ;;  %s584_s10 = smov 0  }
   0x5   :  { %s586_s11 = smov 0   ;;  %s588_s12 = smov 0  }
   0x6 LB: > { %s601_s13 = sadd.s32 4294967295, %s562_s12   ;;  %s604_s14 = sadd.s32 1, %s562_s12   ;;  %s562_s12 = sphi %s588_s12, %s725_s12   ;;  %s558_s11 = sphi %s586_s11, %s724_s11   ;;  %s554_s10 = sphi %s584_s10, %s723_s10   ;;  %s550_s9 = sphi %s582_s9, %s722_s9  }
   0x7   : > { %s23_s15 = ssub.s32 %s562_s12, %s604_s14  ;;  %s26_s16 = sadd.s32 1, %s558_s11 }
   0x8   : > { %p24_p0 = scmp.eq.s32.totalorder %s23_s15, 0  ;;  %p33_p1 = scmp.ne.s32.totalorder %s558_s11, %s554_s10 }
   0x9   : > { %p34_p2 = scmp.eq.s32.totalorder %s562_s12, 0  ;;  %p39_p3 = scmp.ne.s32.totalorder %s554_s10, %s550_s9 }
   0xa   : > { %s614_s17 = scalar_select %p24_p0, %s558_s11, %s26_s16  }
   0xb   : > { %p616_p4 = por %p34_p2, %p33_p1  ;;  %p40_p5 = scmp.eq.s32.totalorder %s601_s13, 0 }
   0xc   : > { %p384_p6 = scmp.lt.s32.totalorder %s562_s12, 2  ;;  %s627_s20 = sand.u32 1, %s558_s11  }
   0xd   : > { %p622_p7 = por %p40_p5, %p39_p3  ;;  %s354_s21 = sshll.u32 %s627_s20, 3 }
   0xe   : > { %s355_s22 = sshll.u32 %s562_s12, 3  ;;  %s114_s26 = scalar_lea.vmem [#allocation3], %s354_s21 }
   0xf   : > { %s118_s25 = scalar_lea.hbm %s715_s0, %s355_s22  ;;  %s122_s27 = sshll.u32 %s114_s26, 4  ;;  %s123_s27 = int_to_ptr.vmem [resolvable:$true] %s122_s27 }
  0x10   : > { %s120_s28 = sshll.u32 %s118_s25, 4  ;;  %p636_p8 = pnand %p384_p6, %p616_p4  ;;  %s121_s28 = int_to_ptr.hbm [resolvable:$true] %s120_s28 }
  0x11   : > { %p358_p9 = scmp.ge.s32.totalorder %s562_s12, 1  ;;  %p146_p10 = scmp.lt.s32.totalorder %s562_s12, 3 }
  0x12   : > { %s111_s30 = scalar_lea.sflag [#allocation4], %s627_s20  ;;  %s432_s3 = sshra.s32 %s121_s28, 4  ;;  %s433_s3 = int_to_ptr.hbm [resolvable:$true] %s432_s3 }
  0x13   : > { %s434_s4 = scalar_lea.hbm %s433_s3, 8  ;;  %p436_p12 = pneg %p636_p8 }
  0x14   : > { %p435_p11 = scmp.ne.s32.totalorder %s433_s3, %s434_s4  ;;  %s439_s7 = scalar_lea.hbm %s715_s0, 16 }
  0x15   : > { %p440_p1 = scmp.lt.s32.totalorder %s433_s3, %s715_s0  ;;  %p441_p2 = scmp.lt.s32.totalorder %s439_s7, %s434_s4 }
  0x16   : > { %p437_p13 = pnand %p436_p12, %p435_p11 }
  0x17   : > { %p442_p3 = por %p441_p2, %p440_p1 }
  0x18   : > { %p438_p0 = pneg %p437_p13 }
  0x1a   : > { %p443_p4 = pnand %p442_p3, %p438_p0 }
  0x1c   : > { %446 = shalt.err (!%p443_p4)
}
  0x1d   : > { %380 = dma.hbm_to_vmem [thread:$0]  (!%p636_p8), %s121_s28, 128, %s123_s27, %s111_s30  }
  0x1e   : > { %p660_p5 = pnand %p358_p9, %p146_p10  ;;  %s137_s23 = scalar_lea.hbm %s716_s1, %s355_s22 }
  0x1f   : > { %s133_s24 = scalar_lea.vmem [#allocation6], %s354_s21  ;;  %s139_s26 = sshll.u32 %s137_s23, 4  ;;  %s140_s26 = int_to_ptr.hbm [resolvable:$true] %s139_s26 }
  0x20   : > { %s141_s25 = sshll.u32 %s133_s24, 4  ;;  %s130_s3 = scalar_lea.sflag [#allocation7], %s627_s20  ;;  %s142_s25 = int_to_ptr.vmem [resolvable:$true] %s141_s25 }
  0x21   : > { %s462_s4 = sshra.s32 %s140_s26, 4  ;;  %s469_s28 = scalar_lea.hbm %s716_s1, 16  ;;  %s463_s4 = int_to_ptr.hbm [resolvable:$true] %s462_s4 }
  0x22   : > { %s464_s5 = scalar_lea.hbm %s463_s4, 8  ;;  %p470_p11 = scmp.lt.s32.totalorder %s463_s4, %s716_s1 }
  0x23   : > { %p465_p6 = scmp.ne.s32.totalorder %s463_s4, %s464_s5  ;;  %p471_p13 = scmp.lt.s32.totalorder %s469_s28, %s464_s5 }
  0x25   : > { %p467_p9 = pnand %p465_p6, %p436_p12  ;;  %p472_p0 = por %p471_p13, %p470_p11 }
  0x27   : > { %p468_p10 = pneg %p467_p9 }
  0x29   : > { %p473_p1 = pnand %p472_p0, %p468_p10 }
  0x2b   : > { %476 = shalt.err (!%p473_p1)
}
  0x2c   : > { %383 = dma.hbm_to_vmem [thread:$0]  (!%p636_p8), %s140_s26, 128, %s142_s25, %s130_s3  }
  0x2d   : > { %150 = sbr.rel (%p660_p5) target bundleno = 482 (0x1e2), region = 28  ;;  %s152_s20 = sand.u32 (!%p660_p5), 1, %s554_s10  }
  0x2e   : > { %s359_s21 = sshll.u32 (!%p660_p5), %s152_s20, 3  ;;  %s153_s6 = scalar_lea.sflag (!%p660_p5), [#allocation4], %s152_s20 }
  0x2f   : > { %s156_s7 = scalar_lea.vmem (!%p660_p5), [#allocation3], %s359_s21 }
  0x32   : > { %537 = dma.done.wait (%p622_p7), %s153_s6, 128  }
  0x33   : > { %539 = vsyncadd (%p622_p7), %s153_s6, 4294967168  ;;  %s163_s8 = scalar_lea.sflag [#allocation7], %s152_s20  ;;  %s166_s9 = scalar_lea.vmem [#allocation6], %s359_s21 }
  0x34   : > { %541 = dma.done.wait (%p622_p7), %s163_s8, 128  }
  0x35   : > { %543 = vsyncadd (%p622_p7), %s163_s8, 4294967168  ;;  %p361_p8 = scmp.ne.s32.totalorder %s601_s13, 0 }
  0x37   : > { %191 = sbr.rel (%p361_p8) target bundleno = 62 (0x3e), region = 40 }
  0x3c   : > { %vm192_vm0 = vcmask 0   ;;  %v564_v0 = vmov 0.0  }
  0x3d   : > { %193 = vst.msk [vmem:[#allocation2] sm:$0x1] %vm192_vm0, %v564_v0 }
  0x3e PF: > { %v196_v1 = vld [vmem:[%s166_s9] sm:$0xff]  ;;  %vm198_vm1 = vcmask 80896   ;;  %v194_v3 = vld [vmem:[%s156_s7] sm:$0xff]  ;;  %v240_v18 = vlaneseq  ;;  %s362_s19 = sshll.u32 %s601_s13, 3  ;;  %v565_v41 = vmov 0.0   ;;  %vm260_vm7 = vcmask 0  }
  0x3f   : > { %v197_v2 = vmul.f32 0.5, %v196_v1  ;;  %v195_v5 = vmul.f32 0.5, %v194_v3  ;;  %v243_v26 = vstv %s362_s19  ;;  %p364_p7 = scmp.ne.s32.totalorder %s601_s13, 1 }
  0x40   : > { %v241_v23 = vshrl.u32 %v240_v18, 7 }
  0x41   : > { %v211_v4 = vsel %vm198_vm1, %v197_v2, -inf  ;;  %v199_v6 = vsel %vm198_vm1, %v195_v5, -inf }
  0x42   : > { %212 = vmax.xlane.f32.xlu0 %v211_v4  ;;  %v244_v31 = vadd.s32 %v243_v26, %v241_v23 }
  0x44   : > { %vm245_vm6 = vcmp.lt.s32.totalorder %v244_v31, 12  ;;  %v258_v52 = vld [vmem:[#allocation2] sm:$0x1] }
  0x45   : > { %v363_v42 = vsel %vm245_vm6, 1.0, %v565_v41 }
  0x4a   : > { %200 = vmax.xlane.f32.xlu0 %v199_v6 }
  0xb5   : > { %v213_v7 = vpop.xlane.xlu0 %212 }
  0xb6   : > { %v214_v8 = vsub.f32 %v197_v2, %v213_v7 }
  0xb8   : > { %v215_v9 = vmul.f32 1.442695, %v214_v8 }
  0xba   : > { %422 = vpow2.f32 %v215_v9 }
  0xbd   : > { %v201_v10 = vpop.xlane.xlu0 %200 }
  0xbe   : > { %v202_v11 = vsub.f32 %v195_v5, %v201_v10 }
  0xc0   : > { %v423_v12 = vpop.eup %422  ;;  %v203_v13 = vmul.f32 1.442695, %v202_v11 }
  0xc1   : > { %v217_v14 = vsel %vm198_vm1, %v423_v12, 0.0 }
  0xc2   : > { %424 = vpow2.f32 %v203_v13  ;;  %218 = vadd.xlane.f32.xlu1 %v217_v14 }
  0xc8   : > { %v425_v15 = vpop.eup %424 }
  0xc9   : > { %v205_v16 = vsel %vm198_vm1, %v425_v15, 0.0 }
  0xca   : > { %206 = vadd.xlane.f32.xlu1 %v205_v16 }
 0x135   : > { %v219_v17 = vpop.xlane.xlu1 %218 }
 0x136   : > { %426 = vrcp.f32 %v219_v17  ;;  %v231_v25 = vand.u32 2147483648, %v219_v17  ;;  %v229_v28 = vand.u32 2147483647, %v219_v17  ;;  %vm225_vm3 = vweird.f32 %v219_v17 }
 0x137   : > { %428 = vlog2.f32 %v219_v17 }
 0x138   : > { %v232_v33 = vor.u32 1.1754944e-38, %v231_v25  ;;  %vm230_vm5 = vcmp.eq.f32.partialorder %v229_v28, 8.507059e+37 }
 0x13c   : > { %v427_v19 = vpop.eup %426 }
 0x13d   : > { %v221_v20 = vmul.f32 %v427_v19, %v219_v17  ;;  %v207_v21 = vpop.xlane.xlu1 %206  ;;  %v429_v24 = vpop.eup %428  ;;  %vm226_vm2 = vweird.f32 %v427_v19 }
 0x13e   : > { %430 = vlog2.f32 %v207_v21  ;;  %v236_v29 = vmul.f32 0.6931472, %v429_v24  ;;  %vm227_vm4 = vmor %vm225_vm3, %vm226_vm2 }
 0x13f   : > { %v222_v22 = vsub.f32 1.0, %v221_v20 }
 0x140   : > { %v237_v37 = vsub.f32 %v214_v8, %v236_v29 }
 0x141   : > { %v223_v27 = vmul.f32 %v427_v19, %v222_v22 }
 0x143   : > { %v224_v30 = vadd.f32 %v427_v19, %v223_v27 }
 0x144   : > { %v431_v32 = vpop.eup %430 }
 0x145   : > { %v209_v34 = vmul.f32 0.6931472, %v431_v32  ;;  %v228_v35 = vsel %vm227_vm4, %v427_v19, %v224_v30 }
 0x146   : > { %v233_v36 = vsel %vm230_vm5, %v232_v33, %v228_v35 }
 0x147   : > { %v210_v38 = vsub.f32 %v202_v11, %v209_v34  ;;  %v234_v40 = vmul.f32 %v423_v12, %v233_v36 }
 0x149   : > { %v238_v39 = vsub.f32 %v237_v37, %v210_v38 }
 0x14b   : > { %v239_v43 = vmul.f32 %v238_v39, %v234_v40 }
 0x14d   : > { %v248_v44 = vmul.f32 %v363_v42, %v239_v43 }
 0x14f   : > { %v249_v45 = vsel %vm198_vm1, %v248_v44, 0.0 }
 0x150   : > { %250 = vadd.xlane.f32.xlu2 %v249_v45 }
 0x1c3   : > { %v251_v46 = vpop.xlane.xlu2 %250 }
 0x1c4   : > { %v252_v47 = vrot.slane %v251_v46, 4 }
 0x1c6   : > { %v253_v48 = vadd.f32 %v252_v47, %v251_v46 }
 0x1c8   : > { %v254_v49 = vrot.slane %v253_v48, 2 }
 0x1ca   : > { %v255_v50 = vadd.f32 %v254_v49, %v253_v48 }
 0x1cc   : > { %v256_v51 = vrot.slane %v255_v50, 1 }
 0x1ce   : > { %v257_v53 = vadd.f32 %v256_v51, %v255_v50  ;;  %265 = sbr.rel (%p364_p7) target bundleno = 477 (0x1dd), region = 44 }
 0x1d0   : > { %v259_v54 = vadd.f32 %v258_v52, %v257_v53 }
 0x1d2   : > { %261 = vst.msk [vmem:[#allocation2] sm:$0x1] %vm260_vm7, %v259_v54 }
 0x1d9   : > { %v266_v55 = vld [vmem:[#allocation2] sm:$0x1] }
 0x1da   : > { %v267_v56 = vmul.f32 0.008333334, %v266_v55 }
 0x1dc   : > { %268 = vst.msk [vmem:[#allocation8] sm:$0x1] %vm260_vm7, %v267_v56 }
 0x1dd PF: > { %p385_p12 = scmp.eq.s32.totalorder %s601_s13, 1  ;;  %s566_s29 = smov [#allocation8]  }
 0x1de   : > { %s275_s15 = sshll.u32 %s566_s29, 4  ;;  %s277_s23 = sshll.u32 %s717_s2, 4  ;;  %s276_s15 = int_to_ptr.vmem [resolvable:$true] %s275_s15  ;;  %s278_s23 = int_to_ptr.hbm [resolvable:$true] %s277_s23 }
 0x1df   : > { %374 = dma.vmem_to_hbm [thread:$0]  (%p385_p12), %s276_s15, 16, %s278_s23, [#allocation5]  }
 0x1e0   : > { %545 = dma.done.wait (%p385_p12), [#allocation5], 16  }
 0x1e1   : > { %547 = vsyncadd (%p385_p12), [#allocation5], 4294967280 }
 0x1e2 PF: > { %p16_p2 = scmp.ge.s32.totalorder %s604_s14, 4   ;;  %s722_s9 = smov %s554_s10 }
 0x1e3   : > { %s723_s10 = smov %s558_s11  ;;  %s724_s11 = smov %s614_s17 }
 0x1e4   : > { %s725_s12 = smov %s604_s14  ;;  %18 = sbr.rel (!%p16_p2) target bundleno = 6 (0x6), region = 86 }
 0x1e9   :  { %291 = vsyncpa [#allocation4], 1 }
 0x1ea   :  { %293 = vsyncpa [#allocation4 + $0x1], 1 }
 0x1eb   :  { %294 = vsyncpa [#allocation7], 1 }
 0x1ec   :  { %296 = vsyncpa [#allocation7 + $0x1], 1 }
 0x1ed   :  { %297 = vsyncpa [#allocation5], 1 }
 0x1ee   :  { %299 = vsyncpa [#allocation5 + $0x1], 1 }

</bundles_post_ra>
